<compile_context>
chip_gen: v6e
topology: v6e:2x2x1
jax: 0.10.0
libtpu: 0.0.40
codegen_flags: <defaults>
</compile_context>

<pallas_src>
import math

import jax
import jax.numpy as jnp
from jax import lax
from jax.experimental import pallas as pl
from jax.experimental.pallas import tpu as pltpu


_VMEM_LIMIT_BYTES = 32 * 1024 * 1024      # explicit scoped-VMEM limit (safe on v5e/v6e/v7x)
_STEP_BYTES_BUDGET = 12 * 1024 * 1024     # modeled per-step footprint target


def _round_up(a: int, b: int) -> int:
    return ((a + b - 1) // b) * b


# --------------------------------------------------------------------------- #
# Kernel helpers
# --------------------------------------------------------------------------- #
def _make_pow_root(p):
    """x**p and the p-th root, matching torch's lp_pool2d numerics."""
    p_int = int(p) if float(p) == int(p) else None
    if p_int is not None:
        if p_int == 1:
            pow_fn = lambda v: v
        else:
            pow_fn = lambda v: lax.integer_pow(v, p_int)   # exact for negative bases
    else:
        pow_fn = lambda v: jnp.power(v, float(p))           # NaN for neg base (torch too)

    inv_p = 1.0 / float(p)
    if p_int == 1:
        root_fn = lambda s: s
    elif p_int == 2:
        root_fn = lambda s: jnp.sqrt(s)
    elif p_int == 4:
        root_fn = lambda s: jnp.sqrt(jnp.sqrt(s))
    else:
        # EUP log/exp path; NaN for negative window sums (same as PyTorch).
        root_fn = lambda s: jnp.power(s, inv_p)
    return pow_fn, root_fn


def _window_matrix(in_dim: int, out_dim: int, k: int, stride: int, out_on_rows: bool):
    """0/1 pooling matrix: entry is 1 iff input index lies in the output's window."""
    shape = (out_dim, in_dim) if out_on_rows else (in_dim, out_dim)
    in_axis = 1 if out_on_rows else 0
    out_axis = 0 if out_on_rows else 1
    ii = lax.broadcasted_iota(jnp.int32, shape, in_axis)
    oo = lax.broadcasted_iota(jnp.int32, shape, out_axis)
    d = ii - oo * stride
    return ((d >= 0) & (d < k)).astype(jnp.float32)


def _make_fast_kernel(p, k: int, stride: int, W: int, Wo: int):
    """Fast path: input block is (rows, stride*W); window rows are contiguous lane groups."""
    pow_fn, root_fn = _make_pow_root(p)

    def kernel(x_ref, o_ref):
        # Sum x**p over the k window rows: k static lane slices + VPU adds.
        acc = pow_fn(x_ref[:, 0:W].astype(jnp.float32))
        for i in range(1, k):
            acc = acc + pow_fn(x_ref[:, i * W:(i + 1) * W].astype(jnp.float32))
        # Pool along W with a 0/1 banded matrix on the (otherwise idle) MXU.
        pw = _window_matrix(W, Wo, k, stride, out_on_rows=False)        # (W, Wo)
        s = jnp.dot(acc, pw, preferred_element_type=jnp.float32)        # (rows, Wo)
        o_ref[...] = root_fn(s).astype(o_ref.dtype)

    return kernel


def _make_general_kernel(p, k: int, stride: int, H: int, W: int, Ho: int, Wo: int, tbc: int):
    """General path (overlapping windows / H remainder): per-image 0/1 matmul pooling."""
    pow_fn, root_fn = _make_pow_root(p)

    def kernel(x_ref, o_ref):
        pw = _window_matrix(W, Wo, k, stride, out_on_rows=False)        # (W, Wo)
        ph = _window_matrix(H, Ho, k, stride, out_on_rows=True)         # (Ho, H)
        for t in range(tbc):
            xp = pow_fn(x_ref[t * H:(t + 1) * H, :].astype(jnp.float32))          # (H, W)
            tmp = jnp.dot(xp, pw, preferred_element_type=jnp.float32)             # (H, Wo)
            s = jnp.dot(ph, tmp, preferred_element_type=jnp.float32)              # (Ho, Wo)
            o_ref[t * Ho:(t + 1) * Ho, :] = root_fn(s).astype(o_ref.dtype)

    return kernel


# --------------------------------------------------------------------------- #
# Tiling / grid helpers
# --------------------------------------------------------------------------- #
def _choose_images_per_step(BC, rows_in, lanes_in, rows_out, lanes_out,
                            itemsize, unroll_cap=None):
    """Images per grid step: dtype-aware footprint model, (8,128)-safe row counts."""
    sub = max(8, 32 // max(itemsize, 1))                 # sublane tile: f32->8, bf16->16, i8->32

    def need(d):                                         # multiplier so tbc*d % sub == 0
        return sub // math.gcd(d, sub)

    granule = need(rows_in) * need(rows_out) // math.gcd(need(rows_in), need(rows_out))
    li = _round_up(lanes_in, 128)
    lo = _round_up(lanes_out, 128)

    def footprint(t):
        ri = _round_up(t * rows_in, sub)
        ro = _round_up(t * rows_out, sub)
        ro8 = _round_up(t * rows_out, 8)
        return (2 * ri * li * itemsize          # input double buffer
                + 2 * ro * lo * itemsize        # output double buffer
                + 3 * ro8 * li * 4              # f32 pow / accumulator temporaries
                + 2 * ro8 * lo * 4)             # f32 matmul result / root temporary

    if BC <= granule or footprint(granule) > _STEP_BYTES_BUDGET:
        t = min(BC, granule)
    else:
        t = granule
        while 2 * t <= BC and footprint(2 * t) <= _STEP_BYTES_BUDGET:
            t *= 2
        while t + granule <= BC and footprint(t + granule) <= _STEP_BYTES_BUDGET:
            t += granule

    if unroll_cap is not None and t > unroll_cap:
        t = min(BC, max(granule, (unroll_cap // granule) * granule))
    return max(1, t)


def _grid_semantics(grid_size: int):
    """CORE_PARALLEL only on multi-TensorCore chips (v7x); plain parallel elsewhere."""
    if grid_size >= 2:
        kind = ""
        try:
            kind = jax.devices()[0].device_kind.lower()
        except Exception:
            pass
        if "v7" in kind or "tpu7" in kind:
            cp = getattr(pltpu, "CORE_PARALLEL", None)
            if cp is not None:
                return (cp,)
    return ("parallel",)


# --------------------------------------------------------------------------- #
# Public entry point
# --------------------------------------------------------------------------- #
def lp_pool2d_pallas(x, norm_type: int = 3, kernel_size: int = 2, stride: int = 2):
    """x: (B, C, H, W). Returns (B, C, Ho, Wo), same dtype as x (F.lp_pool2d semantics)."""
    B, C, H, W = x.shape
    k = int(kernel_size)
    st = int(stride)
    Ho = (H - k) // st + 1                 # ceil_mode=False (PyTorch default)
    Wo = (W - k) // st + 1
    if Ho <= 0 or Wo <= 0:
        raise ValueError("input spatial dims smaller than pooling window")
    BC = B * C
    itemsize = jnp.dtype(x.dtype).itemsize

    # Fast path: every output row's k window rows live in one contiguous group of
    # `stride` input rows (true for the default stride == kernel_size case).
    fast = (H == Ho * st)

    if fast:
        rows_in, lanes_in = Ho, st * W
    else:
        rows_in, lanes_in = H, W

    tbc = _choose_images_per_step(BC, rows_in, lanes_in, Ho, Wo, itemsize,
                                  unroll_cap=None if fast else 32)
    grid = pl.cdiv(BC, tbc)

    if fast:
        x2 = x.reshape(BC * Ho, st * W)            # free (bitcast) reshape
        kernel = _make_fast_kernel(norm_type, k, st, W, Wo)
        in_block = (tbc * Ho, st * W)
    else:
        x2 = x.reshape(BC * H, W)                  # free (bitcast) reshape
        kernel = _make_general_kernel(norm_type, k, st, H, W, Ho, Wo, tbc)
        in_block = (tbc * H, W)
    out_block = (tbc * Ho, Wo)

    out2 = pl.pallas_call(
        kernel,
        out_shape=jax.ShapeDtypeStruct((BC * Ho, Wo), x.dtype),
        grid_spec=pltpu.PrefetchScalarGridSpec(
            num_scalar_prefetch=0,
            grid=(grid,),
            in_specs=[pl.BlockSpec(in_block, lambda b: (b, 0))],
            out_specs=pl.BlockSpec(out_block, lambda b: (b, 0)),
        ),
        compiler_params=pltpu.CompilerParams(
            dimension_semantics=_grid_semantics(grid),
            vmem_limit_bytes=_VMEM_LIMIT_BYTES,
        ),
    )(x2)

    return out2.reshape(B, C, Ho, Wo)


# --------------------------------------------------------------------------- #
# Reference + self-test
# --------------------------------------------------------------------------- #
def _lp_pool2d_ref(x, norm_type=3, kernel_size=2, stride=2):
    """Independent plain-JAX reference (reduce_window), mirrors F.lp_pool2d."""
    p = norm_type
    kk = kernel_size
    xp = (x.astype(jnp.float32)) ** p
    s = jax.lax.reduce_window(
        xp, 0.0, jax.lax.add,
        window_dimensions=(1, 1, kk, kk),
        window_strides=(1, 1, stride, stride),
        padding="VALID",
    )
    return jnp.power(s, 1.0 / p).astype(x.dtype)


if __name__ == "__main__":
    # LPPooling2d(norm_type=3, kernel_size=2, stride=2); no learnable parameters.
    key = jax.random.PRNGKey(0)
    # Positive inputs (typical post-ReLU usage) avoid NaN from fractional roots
    # of negative window sums (which PyTorch also produces).
    x = jax.random.uniform(key, (2, 4, 16, 16), dtype=jnp.float32)

    out = lp_pool2d_pallas(x, norm_type=3, kernel_size=2, stride=2)
    out = jax.block_until_ready(out)

    ref = _lp_pool2d_ref(x, norm_type=3, kernel_size=2, stride=2)
    assert out.shape == (2, 4, 8, 8), out.shape
    # Typically exact to ~1e-6; tolerance also covers the case where the 0/1
    # pooling matmul runs at reduced (bf16-pass) MXU precision.
    assert jnp.allclose(out, ref, rtol=3e-3, atol=1e-5), "mismatch vs reference"

    print("KERNEL_OK")
</pallas_src>

<mosaic_0001>
module attributes {stable_mosaic.version = 11 : i64} {
  func.func @kernel(%arg0: i32, %arg1: memref<64x32xf32, #tpu.memory_space<vmem>>, %arg2: memref<64x8xf32, #tpu.memory_space<vmem>>) attributes {dimension_semantics = [#tpu.dimension_semantics<parallel>], iteration_bounds = array<i64: 1>, scalar_prefetch = 0 : i64, scratch_operands = 0 : i64, tpu.core_type = #tpu.core_type<tc>, window_params = [{transform_indices = @transform_0, window_bounds = array<i64: 64, 32>}, {transform_indices = @transform_1, window_bounds = array<i64: 64, 8>}]} {
    %c0 = arith.constant 0 : index
    %c0_0 = arith.constant 0 : index
    %0 = vector.load %arg1[%c0, %c0_0] : memref<64x32xf32, #tpu.memory_space<vmem>>, vector<64x16xf32>
    %1 = arith.mulf %0, %0 : vector<64x16xf32>
    %2 = arith.mulf %0, %1 : vector<64x16xf32>
    %c0_1 = arith.constant 0 : index
    %c16 = arith.constant 16 : index
    %3 = vector.load %arg1[%c0_1, %c16] : memref<64x32xf32, #tpu.memory_space<vmem>>, vector<64x16xf32>
    %4 = arith.mulf %3, %3 : vector<64x16xf32>
    %5 = arith.mulf %3, %4 : vector<64x16xf32>
    %6 = arith.addf %2, %5 : vector<64x16xf32>
    %7 = tpu.iota {dimensions = array<i32: 0>} : vector<16x8xi32>
    %8 = tpu.iota {dimensions = array<i32: 1>} : vector<16x8xi32>
    %c2_i32 = arith.constant 2 : i32
    %9 = vector.broadcast %c2_i32 : i32 to vector<16x8xi32>
    %10 = arith.muli %8, %9 : vector<16x8xi32>
    %11 = arith.subi %7, %10 : vector<16x8xi32>
    %c0_i32 = arith.constant 0 : i32
    %12 = vector.broadcast %c0_i32 : i32 to vector<16x8xi32>
    %13 = arith.cmpi sge, %11, %12 : vector<16x8xi32>
    %c2_i32_2 = arith.constant 2 : i32
    %14 = vector.broadcast %c2_i32_2 : i32 to vector<16x8xi32>
    %15 = arith.cmpi slt, %11, %14 : vector<16x8xi32>
    %16 = arith.andi %13, %15 : vector<16x8xi1>
    %17 = arith.extui %16 : vector<16x8xi1> to vector<16x8xi32>
    %18 = arith.sitofp %17 : vector<16x8xi32> to vector<16x8xf32>
    %cst = arith.constant dense<0.000000e+00> : vector<64x8xf32>
    %19 = tpu.matmul %6, %18, %cst {dimension_numbers = #tpu.dot_dimension_numbers<[1], [0], [0], [1], [0, 0, 1, 1], [], []>} : vector<64x16xf32>, vector<16x8xf32>, vector<64x8xf32> -> vector<64x8xf32>
    %cst_3 = arith.constant 0.333333343 : f32
    %20 = vector.broadcast %cst_3 : f32 to vector<64x8xf32>
    %21 = math.powf %19, %20 : vector<64x8xf32>
    %c0_4 = arith.constant 0 : index
    %c0_5 = arith.constant 0 : index
    %22 = vector.load %arg2[%c0_4, %c0_5] : memref<64x8xf32, #tpu.memory_space<vmem>>, vector<64x8xf32>
    tpu.vector_store %arg2[%c0_4, %c0_5], %21 {strides = array<i32>} : memref<64x8xf32, #tpu.memory_space<vmem>>, vector<64x8xf32>,
    return
  }
  func.func @transform_0(%arg0: i32) -> (i32, i32) {
    %c0_i32 = arith.constant 0 : i32
    %c0_i32_0 = arith.constant 0 : i32
    return %arg0, %c0_i32 : i32, i32
  }
  func.func @transform_1(%arg0: i32) -> (i32, i32) {
    %c0_i32 = arith.constant 0 : i32
    %c0_i32_0 = arith.constant 0 : i32
    return %arg0, %c0_i32 : i32, i32
  }
}

</mosaic_0001>

<bundles_post_ra>
// kernel: tpu_custom_call.1
= control target key start
LH: loop header
LB: loop body
LE: loop exit
PB: predicated region body
PF: predicated region fallthrough
CT: control target
= control target key end

     0   :  { %v72_v0 = vlaneseq  ;;  %s461_s18 = smov 112   ;;  %v462_v29 = vmov 1.0   ;;  %vm90_vm6 = vcmask 130048   ;;  %vm228_vm7 = vcmask 64512   ;;  %s697_s0 = inlined_call_operand.vmem [shape: f32[64,32], index: 0, kind: input, shape index: {}]   ;;  %s698_s1 = inlined_call_operand.vmem [shape: f32[64,8], index: 1, kind: output, shape index: {}]  }
   0x1   :  { %v9_v1 = vld [vmem:[%s697_s0 + $0x8] sm:$0xff]  ;;  %v8_v2 = vld [vmem:[%s697_s0] sm:$0xff]  ;;  %v14_v8 = vld [vmem:[%s697_s0 + $0x30] sm:$0xff] }
   0x2   :  { %v13_v3 = vld [vmem:[%s697_s0 + $0x28] sm:$0xff]  ;;  %v17_v4 = vmul.f32 %v9_v1, %v9_v1  ;;  %v16_v5 = vmul.f32 %v8_v2, %v8_v2  ;;  %v12_v7 = vld [vmem:[%s697_s0 + $0x20] sm:$0xff]  ;;  %v10_v9 = vld [vmem:[%s697_s0 + $0x10] sm:$0xff]  ;;  %v73_v10 = vshrl.u32 %v72_v0, 7  ;;  %v76_v12 = vand.u32 127, %v72_v0 }
   0x3   :  { %v21_v6 = vmul.f32 %v13_v3, %v13_v3  ;;  %v20_v11 = vmul.f32 %v12_v7, %v12_v7  ;;  %v22_v15 = vmul.f32 %v14_v8, %v14_v8  ;;  %v18_v16 = vmul.f32 %v10_v9, %v10_v9  ;;  %v15_v19 = vld [vmem:[%s697_s0 + $0x38] sm:$0xff] }
   0x4   :  { %v25_v13 = vmul.f32 %v17_v4, %v9_v1  ;;  %v24_v14 = vmul.f32 %v16_v5, %v8_v2  ;;  %v11_v20 = vld [vmem:[%s697_s0 + $0x18] sm:$0xff]  ;;  %v74_v21 = vadd.s32 8, %v73_v10  ;;  %v77_v22 = vmul.u32 2, %v76_v12 }
   0x5   :  { %v29_v17 = vmul.f32 %v21_v6, %v13_v3  ;;  %v28_v18 = vmul.f32 %v20_v11, %v12_v7  ;;  %v30_v25 = vmul.f32 %v22_v15, %v14_v8  ;;  %v26_v26 = vmul.f32 %v18_v16, %v10_v9 }
   0x6   :  { %42 = vrot.lane.b32.xlu1 %v25_v13, %s461_s18  ;;  %40 = vrot.lane.b32.xlu0 %v24_v14, %s461_s18  ;;  %v79_v23 = vsub.s32 %v74_v21, %v77_v22  ;;  %v78_v24 = vsub.s32 %v73_v10, %v77_v22  ;;  %v23_v27 = vmul.f32 %v15_v19, %v15_v19 }
   0x7   :  { %v19_v28 = vmul.f32 %v11_v20, %v11_v20 }
   0x8   :  { %vm81_vm0 = vcmp.ge.s32.totalorder %v79_v23, 0  ;;  %vm83_vm1 = vcmp.lt.s32.totalorder %v79_v23, 2  ;;  %vm80_vm2 = vcmp.ge.s32.totalorder %v78_v24, 0  ;;  %vm82_vm3 = vcmp.lt.s32.totalorder %v78_v24, 2 }
   0x9   :  { %vm85_vm4 = vmand %vm81_vm0, %vm83_vm1  ;;  %v31_v30 = vmul.f32 %v23_v27, %v15_v19  ;;  %v27_v31 = vmul.f32 %v19_v28, %v11_v20 }
   0xa   :  { %50 = vrot.lane.b32.xlu1 %v29_v17, %s461_s18  ;;  %48 = vrot.lane.b32.xlu0 %v28_v18, %s461_s18  ;;  %vm84_vm5 = vmand %vm80_vm2, %vm82_vm3 }
   0xb   :  { %263 = vmatprep.subr.msk.mxu0 %vm85_vm4, %v462_v29  ;;  %279 = vmatprep.subr.msk.mxu1 %vm85_vm4, %v462_v29 }
   0xc   :  { %264 = vmatpush3.msk.msra.mxu0 %vm85_vm4, %v462_v29  ;;  %281 = vmatpush3.msk.msra.mxu1 %vm85_vm4, %v462_v29 }
   0xd   :  { %265 = vmatprep.subr.msk.mxu0 %vm84_vm5, %v462_v29  ;;  %280 = vmatprep.subr.msk.mxu1 %vm84_vm5, %v462_v29 }
   0xe   :  { %52 = vrot.lane.b32.xlu1 %v30_v25, %s461_s18  ;;  %44 = vrot.lane.b32.xlu0 %v26_v26, %s461_s18 }
   0xf   :  { %266 = vmatpush3.msk.msra.mxu0 %vm84_vm5, %v462_v29  ;;  %282 = vmatpush3.msk.msra.mxu1 %vm84_vm5, %v462_v29 }
  0x12   :  { %54 = vrot.lane.b32.xlu1 %v31_v30, %s461_s18  ;;  %46 = vrot.lane.b32.xlu0 %v27_v31, %s461_s18 }
  0x78   :  { %v43_v32 = vpop.permute.xlu1 %42  ;;  %v41_v33 = vpop.permute.xlu0 %40 }
  0x79   :  { %v65_v34 = vadd.f32 %v43_v32, %v25_v13  ;;  %v64_v35 = vadd.f32 %v41_v33, %v24_v14 }
  0x7b   :  { %267 = vmatprep.mubr.msk.f32.mxu0 %vm90_vm6, %v64_v35 }
  0x7c   :  { %v51_v36 = vpop.permute.xlu1 %50  ;;  %268 = vmatmul.mubr.msk.f32.vlgmr.msra.gmra.mxu0 %vm90_vm6, %v65_v34  ;;  %v49_v37 = vpop.permute.xlu0 %48 }
  0x7d   :  { %v69_v38 = vadd.f32 %v51_v36, %v29_v17  ;;  %v68_v39 = vadd.f32 %v49_v37, %v28_v18 }
  0x7f   :  { %273 = vmatprep.mubr.msk.f32.mxu1 %vm90_vm6, %v68_v39 }
  0x80   :  { %v53_v40 = vpop.permute.xlu1 %52  ;;  %274 = vmatmul.mubr.msk.f32.vlgmr.msra.gmra.mxu1 %vm90_vm6, %v69_v38  ;;  %v45_v41 = vpop.permute.xlu0 %44 }
  0x81   :  { %v70_v42 = vadd.f32 %v53_v40, %v30_v25  ;;  %v66_v43 = vadd.f32 %v45_v41, %v26_v26 }
  0x83   :  { %270 = vmatprep.mubr.msk.f32.mxu0 %vm90_vm6, %v66_v43  ;;  %276 = vmatprep.mubr.msk.f32.mxu1 %vm90_vm6, %v70_v42 }
  0x84   :  { %v55_v44 = vpop.permute.xlu1 %54  ;;  %v47_v45 = vpop.permute.xlu0 %46 }
  0x85   :  { %v71_v46 = vadd.f32 %v55_v44, %v31_v30  ;;  %v67_v47 = vadd.f32 %v47_v45, %v27_v31 }
  0x87   :  { %271 = vmatmul.mubr.msk.f32.gmra.mxu0 %vm90_vm6, %v67_v47  ;;  %277 = vmatmul.mubr.msk.f32.gmra.mxu1 %vm90_vm6, %v71_v46 }
 0x13c   :  { %v513_v48 = vpop.f32.mrf.mxu0 }
 0x13d   :  { %v516_v49 = vand.u32 2147483647, %v513_v48  ;;  %vm301_vm8 = vcmp.eq.f32.partialorder %v513_v48, 0.0  ;;  %vm302_vm9 = vcmp.lt.f32.partialorder %v513_v48, 0.0  ;;  %v307_v12 = vand.u32 2147483648, %v513_v48 }
 0x13e   :  { %v518_v50 = vpop.f32.mrf.mxu0 }
 0x13f   :  { %429 = vlog2.f32 %v516_v49  ;;  %v522_v51 = vand.u32 2147483647, %v518_v50  ;;  %vm304_vm10 = vcmp.eq.f32.partialorder %v516_v49, inf  ;;  %vm311_vm11 = vweird.f32 %v516_v49 }
 0x140   :  { %v524_v52 = vpop.f32.mrf.mxu1  ;;  %vm313_vm12 = vcmp.eq.f32.partialorder %v516_v49, 0.0  ;;  %vm283_vm13 = vcmp.eq.f32.partialorder %v518_v50, 0.0  ;;  %vm284_vm14 = vcmp.lt.f32.partialorder %v518_v50, 0.0  ;;  %v289_v15 = vand.u32 2147483648, %v518_v50 }
 0x141   :  { %v527_v53 = vand.u32 2147483647, %v524_v52  ;;  %431 = vlog2.f32 %v522_v51  ;;  %vm374_vm0 = vcmp.lt.f32.partialorder %v524_v52, 0.0  ;;  %v379_v19 = vand.u32 2147483648, %v524_v52 }
 0x142   :  { %v530_v54 = vpop.f32.mrf.mxu1  ;;  %vm286_vm1 = vcmp.eq.f32.partialorder %v522_v51, inf  ;;  %vm293_vm2 = vweird.f32 %v522_v51  ;;  %vm295_vm3 = vcmp.eq.f32.partialorder %v522_v51, 0.0 }
 0x143   :  { %433 = vlog2.f32 %v527_v53  ;;  %v534_v55 = vand.u32 2147483647, %v530_v54  ;;  %vm376_vm4 = vcmp.eq.f32.partialorder %v527_v53, inf  ;;  %vm383_vm5 = vweird.f32 %v527_v53 }
 0x144   :  { %vm385_vm6 = vcmp.eq.f32.partialorder %v527_v53, 0.0  ;;  %vm356_vm15 = vcmp.lt.f32.partialorder %v530_v54, 0.0  ;;  %v361_v30 = vand.u32 2147483648, %v530_v54 }
 0x145   :  { %435 = vlog2.f32 %v534_v55 }
 0x147   :  { %v537_v56 = vpop.f32.mrf.mxu0  ;;  %v539_v57 = vpop.f32.mrf.mxu1 }
 0x148   :  { %v542_v58 = vand.u32 2147483647, %v537_v56  ;;  %v545_v59 = vand.u32 2147483647, %v539_v57  ;;  %v343_v43 = vand.u32 2147483648, %v537_v56  ;;  %v415_v47 = vand.u32 2147483648, %v539_v57 }
 0x149   :  { %v547_v60 = vpop.f32.mrf.mxu0  ;;  %v550_v61 = vpop.f32.mrf.mxu1 }
 0x14a   :  { %437 = vlog2.f32 %v542_v58  ;;  %v554_v63 = vand.u32 2147483647, %v547_v60  ;;  %v557_v1 = vand.u32 2147483647, %v550_v61 }
 0x14b   :  { %439 = vlog2.f32 %v545_v59 }
 0x14c   :  { %v430_v62 = vpop.eup %429  ;;  %441 = vlog2.f32 %v554_v63 }
 0x14d   :  { %v308_v0 = vmul.f32 0.33333334, %v430_v62 }
 0x14e   :  { %v432_v2 = vpop.eup %431 }
 0x14f   :  { %443 = vpow2.f32 %v308_v0  ;;  %v290_v4 = vmul.f32 0.33333334, %v432_v2  ;;  %v325_v0 = vand.u32 2147483648, %v547_v60 }
 0x150   :  { %v434_v3 = vpop.eup %433  ;;  %445 = vlog2.f32 %v557_v1 }
 0x151   :  { %v380_v5 = vmul.f32 0.33333334, %v434_v3  ;;  %447 = vpow2.f32 %v290_v4 }
 0x152   :  { %v436_v6 = vpop.eup %435 }
 0x153   :  { %449 = vpow2.f32 %v380_v5  ;;  %v362_v7 = vmul.f32 0.33333334, %v436_v6  ;;  %v397_v6 = vand.u32 2147483648, %v550_v61 }
 0x155   :  { %451 = vpow2.f32 %v362_v7 }
 0x157   :  { %v438_v8 = vpop.eup %437 }
 0x158   :  { %v440_v9 = vpop.eup %439  ;;  %v344_v10 = vmul.f32 0.33333334, %v438_v8 }
 0x159   :  { %v416_v11 = vmul.f32 0.33333334, %v440_v9  ;;  %v442_v13 = vpop.eup %441 }
 0x15a   :  { %453 = vpow2.f32 %v344_v10  ;;  %v326_v16 = vmul.f32 0.33333334, %v442_v13 }
 0x15b   :  { %455 = vpow2.f32 %v416_v11 }
 0x15c   :  { %v444_v14 = vpop.eup %443  ;;  %457 = vpow2.f32 %v326_v16 }
 0x15d   :  { %v446_v17 = vpop.eup %445  ;;  %v310_v18 = vor.u32 %v444_v14, %v307_v12 }
 0x15e   :  { %v398_v20 = vmul.f32 0.33333334, %v446_v17  ;;  %v448_v21 = vpop.eup %447 }
 0x15f   :  { %v312_v22 = vsel %vm311_vm11, %v513_v48, %v310_v18  ;;  %v292_v25 = vor.u32 %v448_v21, %v289_v15  ;;  %vm355_vm11 = vcmp.eq.f32.partialorder %v530_v54, 0.0 }
 0x160   :  { %v450_v23 = vpop.eup %449  ;;  %v315_v24 = vsel %vm313_vm12, %v307_v12, %v312_v22  ;;  %459 = vpow2.f32 %v398_v20  ;;  %vm358_vm12 = vcmp.eq.f32.partialorder %v534_v55, inf }
 0x161   :  { %v316_v26 = vsel %vm302_vm9, nan, %v315_v24  ;;  %v382_v27 = vor.u32 %v450_v23, %v379_v19  ;;  %v294_v29 = vsel %vm293_vm2, %v518_v50, %v292_v25  ;;  %vm367_vm9 = vcmp.eq.f32.partialorder %v534_v55, 0.0 }
 0x162   :  { %v317_v28 = vsel %vm301_vm8, 0.0, %v316_v26  ;;  %v452_v31 = vpop.eup %451  ;;  %v297_v33 = vsel %vm295_vm3, %v289_v15, %v294_v29  ;;  %vm365_vm8 = vweird.f32 %v534_v55  ;;  %vm338_vm2 = vcmp.lt.f32.partialorder %v537_v56, 0.0 }
 0x163   :  { %v318_v32 = vsel %vm304_vm10, inf, %v317_v28  ;;  %v384_v34 = vsel %vm383_vm5, %v524_v52, %v382_v27  ;;  %v298_v35 = vsel %vm284_vm14, nan, %v297_v33  ;;  %v364_v37 = vor.u32 %v452_v31, %v361_v30 }
 0x164   :  { %230 = vst.msk [vmem:[%s698_s1 + $0x8] sm:$0xff] %vm228_vm7, %v318_v32  ;;  %v387_v36 = vsel %vm385_vm6, %v379_v19, %v384_v34  ;;  %v299_v38 = vsel %vm283_vm13, 0.0, %v298_v35  ;;  %vm337_vm10 = vcmp.eq.f32.partialorder %v537_v56, 0.0  ;;  %vm699_vm14 = vcmp.eq.f32.partialorder %v524_v52, 0.0 }
 0x165   :  { %v388_v39 = vsel %vm374_vm0, nan, %v387_v36  ;;  %v300_v40 = vsel %vm286_vm1, inf, %v299_v38  ;;  %v366_v42 = vsel %vm365_vm8, %v530_v54, %v364_v37  ;;  %vm409_vm13 = vcmp.eq.f32.partialorder %v539_v57, 0.0 }
 0x166   :  { %v389_v41 = vsel %vm699_vm14, 0.0, %v388_v39  ;;  %229 = vst.msk [vmem:[%s698_s1] sm:$0xff] %vm228_vm7, %v300_v40  ;;  %v369_v46 = vsel %vm367_vm9, %v361_v30, %v366_v42  ;;  %vm340_vm0 = vcmp.eq.f32.partialorder %v542_v58, inf  ;;  %vm410_vm1 = vcmp.lt.f32.partialorder %v539_v57, 0.0 }
 0x167   :  { %v454_v44 = vpop.eup %453  ;;  %v390_v45 = vsel %vm376_vm4, inf, %v389_v41  ;;  %v370_v49 = vsel %vm356_vm15, nan, %v369_v46  ;;  %vm347_vm3 = vweird.f32 %v542_v58  ;;  %vm349_vm4 = vcmp.eq.f32.partialorder %v542_v58, 0.0 }
 0x168   :  { %v456_v48 = vpop.eup %455  ;;  %234 = vst.msk [vmem:[%s698_s1 + $0x28] sm:$0xff] %vm228_vm7, %v390_v45  ;;  %v346_v50 = vor.u32 %v454_v44, %v343_v43  ;;  %v371_v51 = vsel %vm355_vm11, 0.0, %v370_v49  ;;  %vm419_vm15 = vweird.f32 %v545_v59  ;;  %vm412_vm5 = vcmp.eq.f32.partialorder %v545_v59, inf }
 0x169   :  { %v418_v52 = vor.u32 %v456_v48, %v415_v47  ;;  %v372_v53 = vsel %vm358_vm12, inf, %v371_v51  ;;  %v458_v2 = vpop.eup %457  ;;  %vm421_vm6 = vcmp.eq.f32.partialorder %v545_v59, 0.0  ;;  %vm329_vm11 = vweird.f32 %v554_v63 }
 0x16a   :  { %v348_v62 = vsel %vm347_vm3, %v537_v56, %v346_v50  ;;  %233 = vst.msk [vmem:[%s698_s1 + $0x20] sm:$0xff] %vm228_vm7, %v372_v53  ;;  %v328_v5 = vor.u32 %v458_v2, %v325_v0  ;;  %vm331_vm12 = vcmp.eq.f32.partialorder %v554_v63, 0.0  ;;  %vm320_vm8 = vcmp.lt.f32.partialorder %v547_v60, 0.0 }
 0x16b   :  { %v351_v54 = vsel %vm349_vm4, %v343_v43, %v348_v62  ;;  %v420_v3 = vsel %vm419_vm15, %v539_v57, %v418_v52  ;;  %vm401_vm9 = vweird.f32 %v557_v1  ;;  %vm322_vm14 = vcmp.eq.f32.partialorder %v554_v63, inf }
 0x16c   :  { %v352_v55 = vsel %vm338_vm2, nan, %v351_v54  ;;  %v423_v4 = vsel %vm421_vm6, %v415_v47, %v420_v3  ;;  %v330_v12 = vsel %vm329_vm11, %v547_v60, %v328_v5  ;;  %vm403_vm2 = vcmp.eq.f32.partialorder %v557_v1, 0.0 }
 0x16d   :  { %v460_v7 = vpop.eup %459  ;;  %v353_v8 = vsel %vm337_vm10, 0.0, %v352_v55  ;;  %v424_v9 = vsel %vm410_vm1, nan, %v423_v4  ;;  %v333_v14 = vsel %vm331_vm12, %v325_v0, %v330_v12  ;;  %vm319_vm10 = vcmp.eq.f32.partialorder %v547_v60, 0.0 }
 0x16e   :  { %v354_v10 = vsel %vm340_vm0, inf, %v353_v8  ;;  %v425_v11 = vsel %vm409_vm13, 0.0, %v424_v9  ;;  %v400_v13 = vor.u32 %v460_v7, %v397_v6  ;;  %v334_v57 = vsel %vm320_vm8, nan, %v333_v14 }
 0x16f   :  { %232 = vst.msk [vmem:[%s698_s1 + $0x18] sm:$0xff] %vm228_vm7, %v354_v10  ;;  %v426_v56 = vsel %vm412_vm5, inf, %v425_v11  ;;  %v335_v59 = vsel %vm319_vm10, 0.0, %v334_v57  ;;  %vm392_vm13 = vcmp.lt.f32.partialorder %v550_v61, 0.0  ;;  %vm391_vm0 = vcmp.eq.f32.partialorder %v550_v61, 0.0 }
 0x170   :  { %236 = vst.msk [vmem:[%s698_s1 + $0x38] sm:$0xff] %vm228_vm7, %v426_v56  ;;  %v402_v58 = vsel %vm401_vm9, %v550_v61, %v400_v13  ;;  %v336_v16 = vsel %vm322_vm14, inf, %v335_v59  ;;  %vm394_vm1 = vcmp.eq.f32.partialorder %v557_v1, inf }
 0x171   :  { %v405_v15 = vsel %vm403_vm2, %v397_v6, %v402_v58  ;;  %231 = vst.msk [vmem:[%s698_s1 + $0x10] sm:$0xff] %vm228_vm7, %v336_v16 }
 0x172   :  { %v406_v17 = vsel %vm392_vm13, nan, %v405_v15 }
 0x173   :  { %v407_v60 = vsel %vm391_vm0, 0.0, %v406_v17 }
 0x174   :  { %v408_v18 = vsel %vm394_vm1, inf, %v407_v60 }
 0x175   :  { %235 = vst.msk [vmem:[%s698_s1 + $0x30] sm:$0xff] %vm228_vm7, %v408_v18 }

</bundles_post_ra>
